<compile_context>
chip_gen: v5e
topology: v5e:2x2
jax: 0.10.0
libtpu: 0.0.40
codegen_flags: <defaults>
</compile_context>

<pallas_src>
import functools

import jax
import jax.numpy as jnp
from jax.experimental import pallas as pl
from jax.experimental.pallas import tpu as pltpu


_TARGET_BLOCK_ELEMS = 256 * 1024   # ~1 MiB of f32 per input block


# ---------------------------------------------------------------------------
# Kernel A: class axis is the LAST axis (2-D input [rows, C]) -> lane reduce.
# ---------------------------------------------------------------------------
def _hloss_rows_kernel(x_ref, o_ref, *, tile_b, total_rows, need_mask):
    x = x_ref[...].astype(jnp.float32)                 # (tile_b, C)
    m = jnp.max(x, axis=1, keepdims=True)              # row max (stability)
    s = x - m
    e = jnp.exp(s)
    z = jnp.sum(e, axis=1, keepdims=True)              # partition function
    t = jnp.sum(e * s, axis=1, keepdims=True)
    h = jnp.log(z) - t / z                             # per-row entropy

    if need_mask:                                      # last tile may be padded
        row = pl.program_id(0) * tile_b + jax.lax.broadcasted_iota(
            jnp.int32, (tile_b, 1), 0)
        h = jnp.where(row < total_rows, h, 0.0)

    partial = jnp.sum(h)                               # scalar per tile

    # Lane-dense (8,128) output slab: partial at [0,0], zeros elsewhere.
    sub = jax.lax.broadcasted_iota(jnp.int32, (8, 128), 0)
    lane = jax.lax.broadcasted_iota(jnp.int32, (8, 128), 1)
    o_ref[...] = jnp.where((sub == 0) & (lane == 0), partial, 0.0)


# ---------------------------------------------------------------------------
# Kernel B: class axis is the MIDDLE axis ([B, C, S]) -> sublane-side reduce.
# Avoids transposing the input in HBM for [B, C, H, W]-style inputs.
# ---------------------------------------------------------------------------
def _hloss_chan_kernel(x_ref, o_ref, *, tile_b, tile_s, total_b, total_s,
                       need_mask_b, need_mask_s):
    x = x_ref[...].astype(jnp.float32)                 # (tile_b, C, tile_s)
    m = jnp.max(x, axis=1, keepdims=True)              # (tile_b, 1, tile_s)
    s = x - m
    e = jnp.exp(s)
    z = jnp.sum(e, axis=1, keepdims=True)
    t = jnp.sum(e * s, axis=1, keepdims=True)
    h = jnp.log(z) - t / z                             # (tile_b, 1, tile_s)

    if need_mask_b:                                    # ragged batch tile
        bi = pl.program_id(0) * tile_b + jax.lax.broadcasted_iota(
            jnp.int32, (tile_b, 1, tile_s), 0)
        h = jnp.where(bi < total_b, h, 0.0)
    if need_mask_s:                                    # ragged spatial tile
        si = pl.program_id(1) * tile_s + jax.lax.broadcasted_iota(
            jnp.int32, (tile_b, 1, tile_s), 2)
        h = jnp.where(si < total_s, h, 0.0)

    partial = jnp.sum(h)

    sub = jax.lax.broadcasted_iota(jnp.int32, (8, 128), 0)
    lane = jax.lax.broadcasted_iota(jnp.int32, (8, 128), 1)
    o_ref[...] = jnp.where((sub == 0) & (lane == 0), partial, 0.0)


def _pick_tile_rows(rows, C, itemsize):
    """Batch tile for the [rows, C] path (sublane granule adapts to dtype)."""
    granule = 8 * (4 // max(1, itemsize))              # 8 f32 / 16 bf16 / 32 i8
    tb = max(1, _TARGET_BLOCK_ELEMS // max(1, C))
    tb = max(granule, (tb // granule) * granule)
    tb = min(tb, 4096)
    rows_padded = ((rows + granule - 1) // granule) * granule
    return min(tb, rows_padded)


def _pick_tile_chan(B, C, S):
    """(batch, spatial) tiles for the [B, C, S] path."""
    if S <= 128:
        tile_s = S                                     # full (allowed: == dim)
    else:
        s_ceil = ((S + 127) // 128) * 128
        budget_s = max(128, (_TARGET_BLOCK_ELEMS // max(1, C)) // 128 * 128)
        tile_s = min(s_ceil, budget_s, 4096)
    tile_b = max(1, _TARGET_BLOCK_ELEMS // max(1, C * tile_s))
    tile_b = min(tile_b, B)
    return tile_b, tile_s


def hloss(x: jax.Array) -> jax.Array:
    """-sum(softmax(x, axis=1) * log_softmax(x, axis=1)) as a scalar (f32)."""
    assert x.ndim >= 2, "HLoss needs a class axis at dim=1"
    itemsize = jnp.dtype(x.dtype).itemsize
    # TODO(synk): for vocab-scale C where a full class-axis block cannot fit
    # VMEM, add a reduction grid axis over C with a streaming logsumexp.

    if x.ndim == 2:
        rows, C = x.shape
        tile_b = _pick_tile_rows(rows, C, itemsize)
        num_tiles = pl.cdiv(rows, tile_b)
        kernel = functools.partial(
            _hloss_rows_kernel, tile_b=tile_b, total_rows=rows,
            need_mask=(rows % tile_b != 0))
        n = rows * C
        partials = pl.pallas_call(
            kernel,
            out_shape=jax.ShapeDtypeStruct((num_tiles * 8, 128), jnp.float32),
            grid_spec=pltpu.PrefetchScalarGridSpec(
                num_scalar_prefetch=0,
                grid=(num_tiles,),
                in_specs=[pl.BlockSpec((tile_b, C), lambda i: (i, 0))],
                out_specs=pl.BlockSpec((8, 128), lambda i: (i, 0)),
            ),
            compiler_params=pltpu.CompilerParams(
                dimension_semantics=("parallel",),
                vmem_limit_bytes=32 * 1024 * 1024,
            ),
            cost_estimate=pl.CostEstimate(
                flops=5 * n,
                transcendentals=n + 2 * rows,
                bytes_accessed=n * itemsize + num_tiles * 8 * 128 * 4,
            ),
        )(x)
        return jnp.sum(partials)

    # ndim > 2: softmax over dim=1.  Flatten trailing dims to (B, C, S) with a
    # layout-preserving reshape and reduce over the class axis in-kernel.
    B, C = x.shape[0], x.shape[1]
    S = 1
    for d in x.shape[2:]:
        S *= d
    x3 = x.reshape(B, C, S)
    tile_b, tile_s = _pick_tile_chan(B, C, S)
    nb = pl.cdiv(B, tile_b)
    ns = pl.cdiv(S, tile_s)
    kernel = functools.partial(
        _hloss_chan_kernel, tile_b=tile_b, tile_s=tile_s,
        total_b=B, total_s=S,
        need_mask_b=(B % tile_b != 0), need_mask_s=(S % tile_s != 0))
    n = B * C * S
    partials = pl.pallas_call(
        kernel,
        out_shape=jax.ShapeDtypeStruct((nb * 8, ns * 128), jnp.float32),
        grid_spec=pltpu.PrefetchScalarGridSpec(
            num_scalar_prefetch=0,
            grid=(nb, ns),
            in_specs=[pl.BlockSpec((tile_b, C, tile_s),
                                   lambda i, j: (i, 0, j))],
            out_specs=pl.BlockSpec((8, 128), lambda i, j: (i, j)),
        ),
        compiler_params=pltpu.CompilerParams(
            dimension_semantics=("parallel", "parallel"),
            vmem_limit_bytes=32 * 1024 * 1024,
        ),
        cost_estimate=pl.CostEstimate(
            flops=5 * n,
            transcendentals=n + 2 * B * S,
            bytes_accessed=n * itemsize + nb * ns * 8 * 128 * 4,
        ),
    )(x3)
    return jnp.sum(partials)


def _hloss_ref(x: jax.Array) -> jax.Array:
    xf = x.astype(jnp.float32)
    p = jax.nn.softmax(xf, axis=1)
    logp = jax.nn.log_softmax(xf, axis=1)
    return -jnp.sum(p * logp)


if __name__ == "__main__":
    key = jax.random.PRNGKey(0)
    k1, k2, k3, k4 = jax.random.split(key, 4)

    # 2-D logits [B, C]; softmax over dim=1.
    x2 = jax.random.normal(k1, (16, 32), dtype=jnp.float32)
    got = jax.block_until_ready(hloss(x2))
    want = jax.block_until_ready(_hloss_ref(x2))
    assert jnp.allclose(got, want, rtol=1e-5, atol=1e-5), (got, want)

    # Ragged 2-D (exercises row masking on a padded partial tile).
    x2r = jax.random.normal(k2, (13, 37), dtype=jnp.float32)
    got = jax.block_until_ready(hloss(x2r))
    want = jax.block_until_ready(_hloss_ref(x2r))
    assert jnp.allclose(got, want, rtol=1e-5, atol=1e-5), (got, want)

    # 4-D input [B, C, H, W]; softmax over dim=1, sum over everything.
    x4 = jax.random.normal(k3, (2, 8, 4, 4), dtype=jnp.float32)
    got = jax.block_until_ready(hloss(x4))
    want = jax.block_until_ready(_hloss_ref(x4))
    assert jnp.allclose(got, want, rtol=1e-5, atol=1e-5), (got, want)

    # Ragged spatial extent (exercises lane masking on a partial S tile).
    x4r = jax.random.normal(k4, (2, 4, 10, 20), dtype=jnp.float32)
    got = jax.block_until_ready(hloss(x4r))
    want = jax.block_until_ready(_hloss_ref(x4r))
    assert jnp.allclose(got, want, rtol=1e-5, atol=1e-5), (got, want)

    print("KERNEL_OK")
</pallas_src>

<mosaic_0001>
module attributes {stable_mosaic.version = 11 : i64} {
  func.func @_hloss_rows_kernel(%arg0: i32, %arg1: memref<16x32xf32, #tpu.memory_space<vmem>>, %arg2: memref<8x128xf32, #tpu.memory_space<vmem>>) attributes {dimension_semantics = [#tpu.dimension_semantics<parallel>], iteration_bounds = array<i64: 1>, scalar_prefetch = 0 : i64, scratch_operands = 0 : i64, tpu.core_type = #tpu.core_type<tc>, window_params = [{transform_indices = @transform_0, window_bounds = array<i64: 16, 32>}, {transform_indices = @transform_1, window_bounds = array<i64: 8, 128>}]} {
    %c0 = arith.constant 0 : index
    %c0_0 = arith.constant 0 : index
    %0 = vector.load %arg1[%c0, %c0_0] : memref<16x32xf32, #tpu.memory_space<vmem>>, vector<16x32xf32>
    %cst = arith.constant dense<0xFF800000> : vector<16xf32>
    %1 = vector.multi_reduction <maximumf>, %0, %cst [1] : vector<16x32xf32> to vector<16xf32>
    %2 = vector.shape_cast %1 : vector<16xf32> to vector<16x1xf32>
    %3 = vector.broadcast %2 : vector<16x1xf32> to vector<16x32xf32>
    %4 = arith.subf %0, %3 : vector<16x32xf32>
    %5 = math.exp %4 : vector<16x32xf32>
    %cst_1 = arith.constant dense<0.000000e+00> : vector<16xf32>
    %6 = vector.multi_reduction <add>, %5, %cst_1 [1] : vector<16x32xf32> to vector<16xf32>
    %7 = vector.shape_cast %6 : vector<16xf32> to vector<16x1xf32>
    %8 = arith.mulf %5, %4 : vector<16x32xf32>
    %cst_2 = arith.constant dense<0.000000e+00> : vector<16xf32>
    %9 = vector.multi_reduction <add>, %8, %cst_2 [1] : vector<16x32xf32> to vector<16xf32>
    %10 = vector.shape_cast %9 : vector<16xf32> to vector<16x1xf32>
    %11 = math.log %7 : vector<16x1xf32>
    %12 = arith.divf %10, %7 : vector<16x1xf32>
    %13 = arith.subf %11, %12 : vector<16x1xf32>
    %14 = vector.shape_cast %13 : vector<16x1xf32> to vector<1x16x1xf32>
    %cst_3 = arith.constant dense<0.000000e+00> : vector<1xf32>
    %15 = vector.multi_reduction <add>, %14, %cst_3 [1, 2] : vector<1x16x1xf32> to vector<1xf32>
    %16 = vector.shape_cast %15 : vector<1xf32> to vector<1x1x1xf32>
    %17 = vector.extract %16[0, 0, 0] : f32 from vector<1x1x1xf32>
    %18 = tpu.iota {dimensions = array<i32: 0>} : vector<8x128xi32>
    %19 = tpu.iota {dimensions = array<i32: 1>} : vector<8x128xi32>
    %c0_i32 = arith.constant 0 : i32
    %20 = vector.broadcast %c0_i32 : i32 to vector<8x128xi32>
    %21 = arith.cmpi eq, %18, %20 : vector<8x128xi32>
    %c0_i32_4 = arith.constant 0 : i32
    %22 = vector.broadcast %c0_i32_4 : i32 to vector<8x128xi32>
    %23 = arith.cmpi eq, %19, %22 : vector<8x128xi32>
    %24 = arith.andi %21, %23 : vector<8x128xi1>
    %cst_5 = arith.constant 0.000000e+00 : f32
    %25 = vector.broadcast %17 : f32 to vector<8x128xf32>
    %26 = vector.broadcast %cst_5 : f32 to vector<8x128xf32>
    %27 = arith.select %24, %25, %26 : vector<8x128xi1>, vector<8x128xf32>
    %c0_6 = arith.constant 0 : index
    %c0_7 = arith.constant 0 : index
    %28 = vector.load %arg2[%c0_6, %c0_7] : memref<8x128xf32, #tpu.memory_space<vmem>>, vector<8x128xf32>
    tpu.vector_store %arg2[%c0_6, %c0_7], %27 {strides = array<i32>} : memref<8x128xf32, #tpu.memory_space<vmem>>, vector<8x128xf32>,
    return
  }
  func.func @transform_0(%arg0: i32) -> (i32, i32) {
    %c0_i32 = arith.constant 0 : i32
    %c0_i32_0 = arith.constant 0 : i32
    return %arg0, %c0_i32 : i32, i32
  }
  func.func @transform_1(%arg0: i32) -> (i32, i32) {
    %c0_i32 = arith.constant 0 : i32
    %c0_i32_0 = arith.constant 0 : i32
    return %arg0, %c0_i32 : i32, i32
  }
}

</mosaic_0001>

<bundles_post_ra>
// kernel: tpu_custom_call.1
= control target key start
LH: loop header
LB: loop body
LE: loop exit
PB: predicated region body
PF: predicated region fallthrough
CT: control target
= control target key end

     0   :  { %6 = vsyncpa [#allocation3], 0  ;;  %s226_s0 = inlined_call_operand.hbm [shape: f32[16,32], index: 0, kind: input, shape index: {}]   ;;  %s227_s1 = inlined_call_operand.hbm [shape: f32[8,128], index: 1, kind: output, shape index: {}]  }
   0x1   :  { %7 = vsyncpa [#allocation4], 0  ;;  %s12_s8 = sshll.u32 %s226_s0, 4  ;;  %s200_s9 = smov [#allocation2]   ;;  %s13_s8 = int_to_ptr.hbm [resolvable:$true] %s12_s8 }
   0x2   :  { %s14_s10 = sshll.u32 %s200_s9, 4  ;;  %s201_s11 = smov 128   ;;  %s15_s10 = int_to_ptr.vmem [resolvable:$true] %s14_s10 }
   0x3   :  { %s202_s12 = smov 8  }
   0x4   :  { %20 = dma.hbm_to_vmem [thread:$0]  %s13_s8, 256, %s15_s10, [#allocation3], %s201_s11, %s201_s11, %s202_s12  }
   0x5   :  { %196 = dma.done.wait [#allocation3], 256  }
   0x6   :  { %197 = vsyncadd [#allocation3], 4294967040  ;;  %vm27_vm0 = vcmask 261120   ;;  %v25_v0 = vld [vmem:[#allocation2] sm:$0xff]  ;;  %v26_v2 = vld [vmem:[#allocation2 + $0x8] sm:$0xff]  ;;  %vm90_vm9 = vcmask 7168   ;;  %v103_v60 = vlaneseq }
   0x7   :  { %v28_v1 = vsel %vm27_vm0, %v25_v0, -inf  ;;  %v31_v3 = vsel %vm27_vm0, %v26_v2, -inf  ;;  %s203_s0 = smov [#allocation5]   ;;  %s120_s16 = sshll.u32 %s227_s1, 4  ;;  %s121_s16 = int_to_ptr.hbm [resolvable:$true] %s120_s16 }
   0x8   :  { %29 = vmax.xlane.f32.xlu0 %v28_v1  ;;  %v104_v61 = vshrl.u32 %v103_v60, 7  ;;  %v106_v62 = vand.u32 127, %v103_v60  ;;  %s118_s13 = sshll.u32 %s203_s0, 4  ;;  %s119_s13 = int_to_ptr.vmem [resolvable:$true] %s118_s13 }
   0xa   :  { %vm107_vm10 = vcmp.eq.s32.totalorder %v104_v61, 0  ;;  %vm108_vm11 = vcmp.eq.s32.totalorder %v106_v62, 0 }
   0xb   :  { %vm109_vm12 = vmand %vm107_vm10, %vm108_vm11 }
  0x10   :  { %32 = vmax.xlane.f32.xlu0 %v31_v3 }
  0x7b   :  { %v30_v4 = vpop.xlane.xlu0 %29 }
  0x7c   :  { %v34_v5 = vsub.f32 %v25_v0, %v30_v4 }
  0x7e   :  { %v36_v6 = vmul.f32 1.442695, %v34_v5 }
  0x80   :  { %136 = vpow2.f32 %v36_v6 }
  0x83   :  { %v33_v7 = vpop.xlane.xlu0 %32 }
  0x84   :  { %v35_v8 = vsub.f32 %v26_v2, %v33_v7 }
  0x86   :  { %v137_v9 = vpop.eup %136  ;;  %v38_v10 = vmul.f32 1.442695, %v35_v8 }
  0x87   :  { %v40_v11 = vsel %vm27_vm0, %v137_v9, 0.0  ;;  %v46_v12 = vmul.f32 %v137_v9, %v34_v5 }
  0x88   :  { %138 = vpow2.f32 %v38_v10  ;;  %41 = vadd.xlane.f32.xlu1 %v40_v11 }
  0x89   :  { %v48_v13 = vsel %vm27_vm0, %v46_v12, 0.0 }
  0x8a   :  { %49 = vadd.xlane.f32.xlu2 %v48_v13 }
  0x8e   :  { %v139_v14 = vpop.eup %138 }
  0x8f   :  { %v43_v15 = vsel %vm27_vm0, %v139_v14, 0.0  ;;  %v47_v16 = vmul.f32 %v139_v14, %v35_v8 }
  0x90   :  { %44 = vadd.xlane.f32.xlu1 %v43_v15 }
  0x91   :  { %v51_v17 = vsel %vm27_vm0, %v47_v16, 0.0 }
  0x92   :  { %52 = vadd.xlane.f32.xlu2 %v51_v17 }
  0xfb   :  { %v42_v18 = vpop.xlane.xlu1 %41 }
  0xfc   :  { %140 = vrcp.f32 %v42_v18  ;;  %v69_v24 = vand.u32 2147483648, %v42_v18  ;;  %vm63_vm2 = vweird.f32 %v42_v18  ;;  %v67_v26 = vand.u32 2147483647, %v42_v18 }
  0xfd   :  { %v50_v28 = vpop.xlane.xlu2 %49 }
  0xfe   :  { %v70_v31 = vor.u32 1.1754944e-38, %v69_v24  ;;  %vm68_vm4 = vcmp.eq.f32.partialorder %v67_v26, 8.507059e+37 }
 0x102   :  { %v141_v19 = vpop.eup %140 }
 0x103   :  { %v59_v20 = vmul.f32 %v141_v19, %v42_v18  ;;  %v45_v21 = vpop.xlane.xlu1 %44  ;;  %vm64_vm1 = vweird.f32 %v141_v19 }
 0x104   :  { %142 = vrcp.f32 %v45_v21  ;;  %vm65_vm3 = vmor %vm63_vm2, %vm64_vm1  ;;  %v84_v34 = vand.u32 2147483648, %v45_v21  ;;  %v82_v36 = vand.u32 2147483647, %v45_v21  ;;  %vm78_vm6 = vweird.f32 %v45_v21 }
 0x105   :  { %v60_v22 = vsub.f32 1.0, %v59_v20  ;;  %144 = vlog2.f32 %v42_v18  ;;  %v53_v44 = vpop.xlane.xlu2 %52 }
 0x106   :  { %146 = vlog2.f32 %v45_v21  ;;  %v85_v41 = vor.u32 1.1754944e-38, %v84_v34  ;;  %vm83_vm8 = vcmp.eq.f32.partialorder %v82_v36, 8.507059e+37 }
 0x107   :  { %v61_v23 = vmul.f32 %v141_v19, %v60_v22 }
 0x109   :  { %v62_v25 = vadd.f32 %v141_v19, %v61_v23 }
 0x10a   :  { %v143_v27 = vpop.eup %142 }
 0x10b   :  { %v66_v29 = vsel %vm65_vm3, %v141_v19, %v62_v25  ;;  %v74_v30 = vmul.f32 %v143_v27, %v45_v21  ;;  %vm79_vm5 = vweird.f32 %v143_v27  ;;  %v145_v37 = vpop.eup %144 }
 0x10c   :  { %v71_v33 = vsel %vm68_vm4, %v70_v31, %v66_v29  ;;  %v147_v40 = vpop.eup %146  ;;  %vm80_vm7 = vmor %vm78_vm6, %vm79_vm5  ;;  %v55_v42 = vmul.f32 0.6931472, %v145_v37 }
 0x10d   :  { %v75_v32 = vsub.f32 1.0, %v74_v30  ;;  %v72_v38 = vmul.f32 %v71_v33, %v50_v28  ;;  %v57_v47 = vmul.f32 0.6931472, %v147_v40 }
 0x10f   :  { %v76_v35 = vmul.f32 %v143_v27, %v75_v32  ;;  %v88_v46 = vsub.f32 %v55_v42, %v72_v38 }
 0x111   :  { %v77_v39 = vadd.f32 %v143_v27, %v76_v35  ;;  %v91_v50 = vsel %vm90_vm9, %v88_v46, 0.0 }
 0x113   :  { %v81_v43 = vsel %vm80_vm7, %v143_v27, %v77_v39 }
 0x114   :  { %v86_v45 = vsel %vm83_vm8, %v85_v41, %v81_v43 }
 0x115   :  { %v87_v48 = vmul.f32 %v86_v45, %v53_v44 }
 0x117   :  { %v89_v49 = vsub.f32 %v57_v47, %v87_v48 }
 0x119   :  { %v92_v51 = vsel %vm90_vm9, %v89_v49, 0.0 }
 0x11a   :  { %v93_v52 = vadd.f32 %v92_v51, %v91_v50 }
 0x11c   :  { %94 = vadd.xlane.f32.xlu0 %v93_v52 }
 0x18f   :  { %v95_v53 = vpop.xlane.xlu0 %94 }
 0x190   :  { %v96_v54 = vrot.slane %v95_v53, 4 }
 0x192   :  { %v97_v55 = vadd.f32 %v96_v54, %v95_v53 }
 0x194   :  { %v98_v56 = vrot.slane %v97_v55, 2 }
 0x196   :  { %v99_v57 = vadd.f32 %v98_v56, %v97_v55 }
 0x198   :  { %v100_v58 = vrot.slane %v99_v57, 1 }
 0x19a   :  { %v101_v59 = vadd.f32 %v100_v58, %v99_v57 }
 0x19c   :  { %130 = vpush %v101_v59 }
 0x1cd   :  { %s131_s17 = spop %130 }
 0x1ce   :  { %v110_v63 = vstv %s131_s17 }
 0x1cf   :  { %v111_v0 = vsel %vm109_vm12, %v110_v63, 0.0 }
 0x1d0   :  { %112 = vst [vmem:[#allocation5] sm:$0xff] %v111_v0 }
 0x1d1   :  { %123 = dma.vmem_to_hbm [thread:$0]  %s119_s13, 128, %s121_s16, [#allocation4]  }
 0x1d2   :  { %198 = dma.done.wait [#allocation4], 128  }
 0x1d3   :  { %199 = vsyncadd [#allocation4], 4294967168 }
 0x1d4   :  { %128 = vsyncpa [#allocation3], 1 }
 0x1d5   :  { %129 = vsyncpa [#allocation4], 1 }

</bundles_post_ra>
